<compile_context>
chip_gen: v5e
topology: v5e:2x2
jax: 0.10.0
libtpu: 0.0.40
codegen_flags: <defaults>
</compile_context>

<pallas_src>
import functools

import jax
import jax.numpy as jnp
from jax.experimental import pallas as pl
from jax.experimental.pallas import tpu as pltpu

LANE = 128
ROW_ALIGN = 16            # covers f32 (8,128) and bf16 (16,128) tiles
MAX_BLOCK_ROWS = 2048     # (2048,128) f32 = 1 MiB per input per buffer
NUM_CORE_SPLIT = 2        # leading "parallel" grid axis (both TCs on v7x)


def _round_up(x, m):
    return -(-x // m) * m


# --------------------------------------------------------------------------
# Fused kernel: Huber sum + MAPE sum + tube-hit count, partial-reduced to
# per-core (8,128) accumulators resident in the output blocks.
# --------------------------------------------------------------------------
def _adaptive_loss_kernel(tube_ref, pred_ref, target_ref,
                          huber_ref, mape_ref, frac_ref,
                          *, delta, n_valid, block_rows, blocks_per_core):
    c = pl.program_id(0)          # core-split axis ("parallel")
    i = pl.program_id(1)          # reduction axis   ("arbitrary")

    @pl.when(i == 0)
    def _init():
        huber_ref[...] = jnp.zeros_like(huber_ref)
        mape_ref[...] = jnp.zeros_like(mape_ref)
        frac_ref[...] = jnp.zeros_like(frac_ref)

    # Load in native dtype, compute in f32.
    pred = pred_ref[...].astype(jnp.float32)
    target = target_ref[...].astype(jnp.float32)

    diff = pred - target
    adiff = jnp.abs(diff)

    # Huber / smooth-L1 with delta (matches torch.nn.HuberLoss)
    huber = jnp.where(adiff < delta,
                      0.5 * diff * diff,
                      delta * (adiff - 0.5 * delta))

    # mape = |target - pred| / clamp(target, min=1e-7)
    mape = adiff / jnp.maximum(target, 1e-7)

    # tube hit: mape < 0.01 * loss_tube
    hits = (mape < 0.01 * tube_ref[0]).astype(jnp.float32)

    def accumulate(h, m, f):
        # (block_rows,128) -> (8,128): adds whole vregs (sublane groups),
        # no cross-lane work inside the hot loop.
        huber_ref[...] += jnp.sum(h.reshape(-1, 8, LANE), axis=0)
        mape_ref[...] += jnp.sum(m.reshape(-1, 8, LANE), axis=0)
        frac_ref[...] += jnp.sum(f.reshape(-1, 8, LANE), axis=0)

    # Logical first row of this (core, step) block in the flattened (rows, 128)
    # view of the inputs.  Row-level arithmetic (int32-safe up to huge sizes).
    row0 = (c * blocks_per_core + i) * block_rows
    full_rows = n_valid // LANE        # completely valid rows
    rem = n_valid % LANE               # valid lanes in row `full_rows`

    needs_mask = row0 + block_rows > full_rows

    @pl.when(jnp.logical_not(needs_mask))
    def _fast():                       # fully valid block: no mask work at all
        accumulate(huber, mape, hits)

    @pl.when(needs_mask)
    def _masked():                     # block touches the ragged / padded tail
        rows_here = pred.shape[0]
        row = row0 + jax.lax.broadcasted_iota(jnp.int32, (rows_here, LANE), 0)
        lane = jax.lax.broadcasted_iota(jnp.int32, (rows_here, LANE), 1)
        valid = (row < full_rows) | ((row == full_rows) & (lane < rem))
        # where (not multiply): out-of-bounds data may be NaN/Inf garbage.
        accumulate(jnp.where(valid, huber, 0.0),
                   jnp.where(valid, mape, 0.0),
                   jnp.where(valid, hits, 0.0))

    @pl.when(i == pl.num_programs(1) - 1)
    def _finalize():
        inv_n = jnp.float32(1.0 / n_valid)
        huber_ref[...] = huber_ref[...] * inv_n
        mape_ref[...] = mape_ref[...] * inv_n
        frac_ref[...] = frac_ref[...] * inv_n


# --------------------------------------------------------------------------
# Wrapper
# --------------------------------------------------------------------------
def adaptive_loss(pred, target, loss_tube, delta=0.01):
    assert pred.shape == target.shape
    n = int(pred.size)
    if n == 0:
        raise ValueError("adaptive_loss: empty input")

    # Flatten in the native dtype (no f32 upcast, no full-slab zero pad).
    # Only pad <=127 elements when n is not a lane multiple.
    def to_slab(a):
        flat = a.reshape(-1)
        if n % LANE != 0:
            flat = jnp.pad(flat, (0, LANE - n % LANE))
        return flat.reshape(-1, LANE)

    pred2 = to_slab(pred)
    target2 = to_slab(target)
    rows = pred2.shape[0]

    block_rows = min(MAX_BLOCK_ROWS, _round_up(rows, ROW_ALIGN))
    if rows < block_rows:
        # Tiny inputs only (< one block): pad rows so the single block is
        # in-bounds.  Costs at most ~1 MiB and only for small inputs.
        pred2 = jnp.pad(pred2, ((0, block_rows - rows), (0, 0)))
        target2 = jnp.pad(target2, ((0, block_rows - rows), (0, 0)))
        rows = block_rows

    total_blocks = -(-rows // block_rows)
    blocks_per_core = -(-total_blocks // NUM_CORE_SPLIT)
    max_block = total_blocks - 1

    # Clamp the block index so a core that runs past the data just re-reads the
    # last real block; its logical rows are >= full_rows so the mask zeroes it.
    def data_map(c, i):
        return (jnp.minimum(c * blocks_per_core + i, max_block), 0)

    tube = jnp.full((1,), loss_tube, jnp.float32)

    kern = functools.partial(_adaptive_loss_kernel,
                             delta=float(delta), n_valid=n,
                             block_rows=block_rows,
                             blocks_per_core=blocks_per_core)

    out_shape = [jax.ShapeDtypeStruct((NUM_CORE_SPLIT * 8, LANE), jnp.float32)
                 for _ in range(3)]
    acc_spec = pl.BlockSpec((8, LANE), lambda c, i: (c, 0))

    huber_p, mape_p, frac_p = pl.pallas_call(
        kern,
        grid=(NUM_CORE_SPLIT, blocks_per_core),
        out_shape=out_shape,
        in_specs=[
            pl.BlockSpec(memory_space=pltpu.MemorySpace.SMEM),        # loss_tube
            pl.BlockSpec((block_rows, LANE), data_map),               # pred
            pl.BlockSpec((block_rows, LANE), data_map),               # target
        ],
        out_specs=[acc_spec, acc_spec, acc_spec],
        compiler_params=pltpu.CompilerParams(
            dimension_semantics=("parallel", "arbitrary")),
    )(tube, pred2, target2)

    # Final cross-lane reduce of the tiny (2*8,128) partials (already /n).
    return {
        'main_loss': jnp.sum(huber_p),
        'mape': jnp.sum(mape_p),
        'tube': jnp.sum(frac_p),
    }


# --------------------------------------------------------------------------
# Pure-JAX reference (mirrors the PyTorch forward literally)
# --------------------------------------------------------------------------
def reference_adaptive_loss(pred, target, loss_tube, delta=0.01):
    diff = pred - target
    adiff = jnp.abs(diff)
    huber = jnp.where(adiff < delta,
                      0.5 * diff * diff,
                      delta * (adiff - 0.5 * delta))
    main_loss = jnp.mean(huber)
    mape = adiff / jnp.maximum(target, 1e-7)
    tube = jnp.sum(mape < 0.01 * loss_tube) / mape.size
    return {'main_loss': main_loss,
            'mape': jnp.mean(mape),
            'tube': tube.astype(jnp.float32)}


if __name__ == "__main__":
    B, S, H = 2, 8, 32
    key = jax.random.PRNGKey(0)
    kt, kn = jax.random.split(key)
    target = jnp.abs(jax.random.normal(kt, (B, S, H), jnp.float32)) + 0.5
    pred = target * (1.0 + 0.05 * jax.random.normal(kn, (B, S, H), jnp.float32))

    # TODO(synk): loss_tube is None in the torch module; supplied externally here.
    loss_tube = 5.0

    out = adaptive_loss(pred, target, loss_tube)
    out = {k: jax.block_until_ready(v) for k, v in out.items()}

    ref = reference_adaptive_loss(pred, target, loss_tube)
    for k in ("main_loss", "mape", "tube"):
        if not jnp.allclose(out[k], ref[k], rtol=1e-4, atol=1e-6):
            raise AssertionError(f"{k}: pallas={out[k]} ref={ref[k]}")

    print("KERNEL_OK")
</pallas_src>

<mosaic_0001>
module attributes {stable_mosaic.version = 11 : i64} {
  func.func @_adaptive_loss_kernel(%arg0: i32, %arg1: i32, %arg2: memref<1xf32, #tpu.memory_space<smem>>, %arg3: memref<16x128xf32, #tpu.memory_space<vmem>>, %arg4: memref<16x128xf32, #tpu.memory_space<vmem>>, %arg5: memref<8x128xf32, #tpu.memory_space<vmem>>, %arg6: memref<8x128xf32, #tpu.memory_space<vmem>>, %arg7: memref<8x128xf32, #tpu.memory_space<vmem>>) attributes {dimension_semantics = [#tpu.dimension_semantics<parallel>, #tpu.dimension_semantics<arbitrary>], iteration_bounds = array<i64: 2, 1>, scalar_prefetch = 0 : i64, scratch_operands = 0 : i64, tpu.core_type = #tpu.core_type<tc>, window_params = [{transform_indices = @transform_0, window_bounds = array<i64: 1>}, {transform_indices = @transform_1, window_bounds = array<i64: 16, 128>}, {transform_indices = @transform_2, window_bounds = array<i64: 16, 128>}, {transform_indices = @transform_3, window_bounds = array<i64: 8, 128>}, {transform_indices = @transform_4, window_bounds = array<i64: 8, 128>}, {transform_indices = @transform_5, window_bounds = array<i64: 8, 128>}]} {
    %c0_i32 = arith.constant 0 : i32
    %0 = arith.cmpi eq, %arg1, %c0_i32 : i32
    %1 = arith.extui %0 : i1 to i32
    %c0_i32_0 = arith.constant 0 : i32
    %2 = arith.cmpi ne, %1, %c0_i32_0 : i32
    scf.if %2 {
      %cst_15 = arith.constant 0.000000e+00 : f32
      %39 = vector.broadcast %cst_15 : f32 to vector<8x128xf32>
      %c0_16 = arith.constant 0 : index
      %c0_17 = arith.constant 0 : index
      %40 = vector.load %arg5[%c0_16, %c0_17] : memref<8x128xf32, #tpu.memory_space<vmem>>, vector<8x128xf32>
      tpu.vector_store %arg5[%c0_16, %c0_17], %39 {strides = array<i32>} : memref<8x128xf32, #tpu.memory_space<vmem>>, vector<8x128xf32>,
      %cst_18 = arith.constant 0.000000e+00 : f32
      %41 = vector.broadcast %cst_18 : f32 to vector<8x128xf32>
      %c0_19 = arith.constant 0 : index
      %c0_20 = arith.constant 0 : index
      %42 = vector.load %arg6[%c0_19, %c0_20] : memref<8x128xf32, #tpu.memory_space<vmem>>, vector<8x128xf32>
      tpu.vector_store %arg6[%c0_19, %c0_20], %41 {strides = array<i32>} : memref<8x128xf32, #tpu.memory_space<vmem>>, vector<8x128xf32>,
      %cst_21 = arith.constant 0.000000e+00 : f32
      %43 = vector.broadcast %cst_21 : f32 to vector<8x128xf32>
      %c0_22 = arith.constant 0 : index
      %c0_23 = arith.constant 0 : index
      %44 = vector.load %arg7[%c0_22, %c0_23] : memref<8x128xf32, #tpu.memory_space<vmem>>, vector<8x128xf32>
      tpu.vector_store %arg7[%c0_22, %c0_23], %43 {strides = array<i32>} : memref<8x128xf32, #tpu.memory_space<vmem>>, vector<8x128xf32>,
    } else {
    }
    %c0 = arith.constant 0 : index
    %c0_1 = arith.constant 0 : index
    %3 = vector.load %arg3[%c0, %c0_1] : memref<16x128xf32, #tpu.memory_space<vmem>>, vector<16x128xf32>
    %c0_2 = arith.constant 0 : index
    %c0_3 = arith.constant 0 : index
    %4 = vector.load %arg4[%c0_2, %c0_3] : memref<16x128xf32, #tpu.memory_space<vmem>>, vector<16x128xf32>
    %5 = arith.subf %3, %4 : vector<16x128xf32>
    %6 = math.absf %5 : vector<16x128xf32>
    %cst = arith.constant 0.00999999977 : f32
    %7 = vector.broadcast %cst : f32 to vector<16x128xf32>
    %8 = arith.cmpf olt, %6, %7 : vector<16x128xf32>
    %cst_4 = arith.constant 5.000000e-01 : f32
    %9 = vector.broadcast %cst_4 : f32 to vector<16x128xf32>
    %10 = arith.mulf %9, %5 : vector<16x128xf32>
    %11 = arith.mulf %10, %5 : vector<16x128xf32>
    %cst_5 = arith.constant 5.000000e-03 : f32
    %12 = vector.broadcast %cst_5 : f32 to vector<16x128xf32>
    %13 = arith.subf %6, %12 : vector<16x128xf32>
    %cst_6 = arith.constant 0.00999999977 : f32
    %14 = vector.broadcast %cst_6 : f32 to vector<16x128xf32>
    %15 = arith.mulf %14, %13 : vector<16x128xf32>
    %16 = arith.select %8, %11, %15 : vector<16x128xi1>, vector<16x128xf32>
    %cst_7 = arith.constant 1.000000e-07 : f32
    %17 = vector.broadcast %cst_7 : f32 to vector<16x128xf32>
    %18 = arith.maximumf %4, %17 : vector<16x128xf32>
    %19 = arith.divf %6, %18 : vector<16x128xf32>
    %c0_8 = arith.constant 0 : index
    %20 = memref.load %arg2[%c0_8] : memref<1xf32, #tpu.memory_space<smem>>
    %cst_9 = arith.constant 0.00999999977 : f32
    %21 = arith.mulf %cst_9, %20 : f32
    %22 = vector.broadcast %21 : f32 to vector<16x128xf32>
    %23 = arith.cmpf olt, %19, %22 : vector<16x128xf32>
    %24 = arith.extui %23 : vector<16x128xi1> to vector<16x128xi32>
    %25 = arith.sitofp %24 : vector<16x128xi32> to vector<16x128xf32>
    %c1_i32 = arith.constant 1 : i32
    %26 = arith.muli %arg0, %c1_i32 : i32
    %27 = arith.addi %26, %arg1 : i32
    %c16_i32 = arith.constant 16 : i32
    %28 = arith.muli %27, %c16_i32 : i32
    %c16_i32_10 = arith.constant 16 : i32
    %29 = arith.addi %28, %c16_i32_10 : i32
    %c4_i32 = arith.constant 4 : i32
    %30 = arith.cmpi sgt, %29, %c4_i32 : i32
    %true = arith.constant true
    %31 = arith.xori %30, %true : i1
    %32 = arith.extui %31 : i1 to i32
    %c0_i32_11 = arith.constant 0 : i32
    %33 = arith.cmpi ne, %32, %c0_i32_11 : i32
    scf.if %33 {
      %c0_15 = arith.constant 0 : index
      %c0_16 = arith.constant 0 : index
      %39 = vector.load %arg5[%c0_15, %c0_16] : memref<8x128xf32, #tpu.memory_space<vmem>>, vector<8x128xf32>
      %40 = vector.shape_cast %16 : vector<16x128xf32> to vector<2x8x128xf32>
      %cst_17 = arith.constant dense<0.000000e+00> : vector<8x128xf32>
      %41 = vector.multi_reduction <add>, %40, %cst_17 [0] : vector<2x8x128xf32> to vector<8x128xf32>
      %42 = arith.addf %39, %41 : vector<8x128xf32>
      %c0_18 = arith.constant 0 : index
      %c0_19 = arith.constant 0 : index
      %43 = vector.load %arg5[%c0_18, %c0_19] : memref<8x128xf32, #tpu.memory_space<vmem>>, vector<8x128xf32>
      tpu.vector_store %arg5[%c0_18, %c0_19], %42 {strides = array<i32>} : memref<8x128xf32, #tpu.memory_space<vmem>>, vector<8x128xf32>,
      %c0_20 = arith.constant 0 : index
      %c0_21 = arith.constant 0 : index
      %44 = vector.load %arg6[%c0_20, %c0_21] : memref<8x128xf32, #tpu.memory_space<vmem>>, vector<8x128xf32>
      %45 = vector.shape_cast %19 : vector<16x128xf32> to vector<2x8x128xf32>
      %cst_22 = arith.constant dense<0.000000e+00> : vector<8x128xf32>
      %46 = vector.multi_reduction <add>, %45, %cst_22 [0] : vector<2x8x128xf32> to vector<8x128xf32>
      %47 = arith.addf %44, %46 : vector<8x128xf32>
      %c0_23 = arith.constant 0 : index
      %c0_24 = arith.constant 0 : index
      %48 = vector.load %arg6[%c0_23, %c0_24] : memref<8x128xf32, #tpu.memory_space<vmem>>, vector<8x128xf32>
      tpu.vector_store %arg6[%c0_23, %c0_24], %47 {strides = array<i32>} : memref<8x128xf32, #tpu.memory_space<vmem>>, vector<8x128xf32>,
      %c0_25 = arith.constant 0 : index
      %c0_26 = arith.constant 0 : index
      %49 = vector.load %arg7[%c0_25, %c0_26] : memref<8x128xf32, #tpu.memory_space<vmem>>, vector<8x128xf32>
      %50 = vector.shape_cast %25 : vector<16x128xf32> to vector<2x8x128xf32>
      %cst_27 = arith.constant dense<0.000000e+00> : vector<8x128xf32>
      %51 = vector.multi_reduction <add>, %50, %cst_27 [0] : vector<2x8x128xf32> to vector<8x128xf32>
      %52 = arith.addf %49, %51 : vector<8x128xf32>
      %c0_28 = arith.constant 0 : index
      %c0_29 = arith.constant 0 : index
      %53 = vector.load %arg7[%c0_28, %c0_29] : memref<8x128xf32, #tpu.memory_space<vmem>>, vector<8x128xf32>
      tpu.vector_store %arg7[%c0_28, %c0_29], %52 {strides = array<i32>} : memref<8x128xf32, #tpu.memory_space<vmem>>, vector<8x128xf32>,
    } else {
    }
    %34 = arith.extui %30 : i1 to i32
    %c0_i32_12 = arith.constant 0 : i32
    %35 = arith.cmpi ne, %34, %c0_i32_12 : i32
    scf.if %35 {
      %39 = tpu.iota {dimensions = array<i32: 0>} : vector<16x128xi32>
      %40 = vector.broadcast %28 : i32 to vector<16x128xi32>
      %41 = arith.addi %40, %39 : vector<16x128xi32>
      %42 = tpu.iota {dimensions = array<i32: 1>} : vector<16x128xi32>
      %c4_i32_15 = arith.constant 4 : i32
      %43 = vector.broadcast %c4_i32_15 : i32 to vector<16x128xi32>
      %44 = arith.cmpi slt, %41, %43 : vector<16x128xi32>
      %c4_i32_16 = arith.constant 4 : i32
      %45 = vector.broadcast %c4_i32_16 : i32 to vector<16x128xi32>
      %46 = arith.cmpi eq, %41, %45 : vector<16x128xi32>
      %c0_i32_17 = arith.constant 0 : i32
      %47 = vector.broadcast %c0_i32_17 : i32 to vector<16x128xi32>
      %48 = arith.cmpi slt, %42, %47 : vector<16x128xi32>
      %49 = arith.andi %46, %48 : vector<16x128xi1>
      %50 = arith.ori %44, %49 : vector<16x128xi1>
      %cst_18 = arith.constant 0.000000e+00 : f32
      %51 = vector.broadcast %cst_18 : f32 to vector<16x128xf32>
      %52 = arith.select %50, %16, %51 : vector<16x128xi1>, vector<16x128xf32>
      %cst_19 = arith.constant 0.000000e+00 : f32
      %53 = vector.broadcast %cst_19 : f32 to vector<16x128xf32>
      %54 = arith.select %50, %19, %53 : vector<16x128xi1>, vector<16x128xf32>
      %cst_20 = arith.constant 0.000000e+00 : f32
      %55 = vector.broadcast %cst_20 : f32 to vector<16x128xf32>
      %56 = arith.select %50, %25, %55 : vector<16x128xi1>, vector<16x128xf32>
      %c0_21 = arith.constant 0 : index
      %c0_22 = arith.constant 0 : index
      %57 = vector.load %arg5[%c0_21, %c0_22] : memref<8x128xf32, #tpu.memory_space<vmem>>, vector<8x128xf32>
      %58 = vector.shape_cast %52 : vector<16x128xf32> to vector<2x8x128xf32>
      %cst_23 = arith.constant dense<0.000000e+00> : vector<8x128xf32>
      %59 = vector.multi_reduction <add>, %58, %cst_23 [0] : vector<2x8x128xf32> to vector<8x128xf32>
      %60 = arith.addf %57, %59 : vector<8x128xf32>
      %c0_24 = arith.constant 0 : index
      %c0_25 = arith.constant 0 : index
      %61 = vector.load %arg5[%c0_24, %c0_25] : memref<8x128xf32, #tpu.memory_space<vmem>>, vector<8x128xf32>
      tpu.vector_store %arg5[%c0_24, %c0_25], %60 {strides = array<i32>} : memref<8x128xf32, #tpu.memory_space<vmem>>, vector<8x128xf32>,
      %c0_26 = arith.constant 0 : index
      %c0_27 = arith.constant 0 : index
      %62 = vector.load %arg6[%c0_26, %c0_27] : memref<8x128xf32, #tpu.memory_space<vmem>>, vector<8x128xf32>
      %63 = vector.shape_cast %54 : vector<16x128xf32> to vector<2x8x128xf32>
      %cst_28 = arith.constant dense<0.000000e+00> : vector<8x128xf32>
      %64 = vector.multi_reduction <add>, %63, %cst_28 [0] : vector<2x8x128xf32> to vector<8x128xf32>
      %65 = arith.addf %62, %64 : vector<8x128xf32>
      %c0_29 = arith.constant 0 : index
      %c0_30 = arith.constant 0 : index
      %66 = vector.load %arg6[%c0_29, %c0_30] : memref<8x128xf32, #tpu.memory_space<vmem>>, vector<8x128xf32>
      tpu.vector_store %arg6[%c0_29, %c0_30], %65 {strides = array<i32>} : memref<8x128xf32, #tpu.memory_space<vmem>>, vector<8x128xf32>,
      %c0_31 = arith.constant 0 : index
      %c0_32 = arith.constant 0 : index
      %67 = vector.load %arg7[%c0_31, %c0_32] : memref<8x128xf32, #tpu.memory_space<vmem>>, vector<8x128xf32>
      %68 = vector.shape_cast %56 : vector<16x128xf32> to vector<2x8x128xf32>
      %cst_33 = arith.constant dense<0.000000e+00> : vector<8x128xf32>
      %69 = vector.multi_reduction <add>, %68, %cst_33 [0] : vector<2x8x128xf32> to vector<8x128xf32>
      %70 = arith.addf %67, %69 : vector<8x128xf32>
      %c0_34 = arith.constant 0 : index
      %c0_35 = arith.constant 0 : index
      %71 = vector.load %arg7[%c0_34, %c0_35] : memref<8x128xf32, #tpu.memory_space<vmem>>, vector<8x128xf32>
      tpu.vector_store %arg7[%c0_34, %c0_35], %70 {strides = array<i32>} : memref<8x128xf32, #tpu.memory_space<vmem>>, vector<8x128xf32>,
    } else {
    }
    %c0_i32_13 = arith.constant 0 : i32
    %36 = arith.cmpi eq, %arg1, %c0_i32_13 : i32
    %37 = arith.extui %36 : i1 to i32
    %c0_i32_14 = arith.constant 0 : i32
    %38 = arith.cmpi ne, %37, %c0_i32_14 : i32
    scf.if %38 {
      %c0_15 = arith.constant 0 : index
      %c0_16 = arith.constant 0 : index
      %39 = vector.load %arg5[%c0_15, %c0_16] : memref<8x128xf32, #tpu.memory_space<vmem>>, vector<8x128xf32>
      %cst_17 = arith.constant 0.001953125 : f32
      %40 = vector.broadcast %cst_17 : f32 to vector<8x128xf32>
      %41 = arith.mulf %39, %40 : vector<8x128xf32>
      %c0_18 = arith.constant 0 : index
      %c0_19 = arith.constant 0 : index
      %42 = vector.load %arg5[%c0_18, %c0_19] : memref<8x128xf32, #tpu.memory_space<vmem>>, vector<8x128xf32>
      tpu.vector_store %arg5[%c0_18, %c0_19], %41 {strides = array<i32>} : memref<8x128xf32, #tpu.memory_space<vmem>>, vector<8x128xf32>,
      %c0_20 = arith.constant 0 : index
      %c0_21 = arith.constant 0 : index
      %43 = vector.load %arg6[%c0_20, %c0_21] : memref<8x128xf32, #tpu.memory_space<vmem>>, vector<8x128xf32>
      %cst_22 = arith.constant 0.001953125 : f32
      %44 = vector.broadcast %cst_22 : f32 to vector<8x128xf32>
      %45 = arith.mulf %43, %44 : vector<8x128xf32>
      %c0_23 = arith.constant 0 : index
      %c0_24 = arith.constant 0 : index
      %46 = vector.load %arg6[%c0_23, %c0_24] : memref<8x128xf32, #tpu.memory_space<vmem>>, vector<8x128xf32>
      tpu.vector_store %arg6[%c0_23, %c0_24], %45 {strides = array<i32>} : memref<8x128xf32, #tpu.memory_space<vmem>>, vector<8x128xf32>,
      %c0_25 = arith.constant 0 : index
      %c0_26 = arith.constant 0 : index
      %47 = vector.load %arg7[%c0_25, %c0_26] : memref<8x128xf32, #tpu.memory_space<vmem>>, vector<8x128xf32>
      %cst_27 = arith.constant 0.001953125 : f32
      %48 = vector.broadcast %cst_27 : f32 to vector<8x128xf32>
      %49 = arith.mulf %47, %48 : vector<8x128xf32>
      %c0_28 = arith.constant 0 : index
      %c0_29 = arith.constant 0 : index
      %50 = vector.load %arg7[%c0_28, %c0_29] : memref<8x128xf32, #tpu.memory_space<vmem>>, vector<8x128xf32>
      tpu.vector_store %arg7[%c0_28, %c0_29], %49 {strides = array<i32>} : memref<8x128xf32, #tpu.memory_space<vmem>>, vector<8x128xf32>,
    } else {
    }
    return
  }
  func.func @transform_0(%arg0: i32, %arg1: i32) -> i32 {
    %c0_i32 = arith.constant 0 : i32
    %c0_i32_0 = arith.constant 0 : i32
    return %c0_i32 : i32
  }
  func.func @transform_1(%arg0: i32, %arg1: i32) -> (i32, i32) {
    %c1_i32 = arith.constant 1 : i32
    %0 = arith.muli %arg0, %c1_i32 : i32
    %1 = arith.addi %0, %arg1 : i32
    %c0_i32 = arith.constant 0 : i32
    %2 = arith.minsi %1, %c0_i32 : i32
    %c0_i32_0 = arith.constant 0 : i32
    %c0_i32_1 = arith.constant 0 : i32
    return %2, %c0_i32_0 : i32, i32
  }
  func.func @transform_2(%arg0: i32, %arg1: i32) -> (i32, i32) {
    %c1_i32 = arith.constant 1 : i32
    %0 = arith.muli %arg0, %c1_i32 : i32
    %1 = arith.addi %0, %arg1 : i32
    %c0_i32 = arith.constant 0 : i32
    %2 = arith.minsi %1, %c0_i32 : i32
    %c0_i32_0 = arith.constant 0 : i32
    %c0_i32_1 = arith.constant 0 : i32
    return %2, %c0_i32_0 : i32, i32
  }
  func.func @transform_3(%arg0: i32, %arg1: i32) -> (i32, i32) {
    %c0_i32 = arith.constant 0 : i32
    %c0_i32_0 = arith.constant 0 : i32
    return %arg0, %c0_i32 : i32, i32
  }
  func.func @transform_4(%arg0: i32, %arg1: i32) -> (i32, i32) {
    %c0_i32 = arith.constant 0 : i32
    %c0_i32_0 = arith.constant 0 : i32
    return %arg0, %c0_i32 : i32, i32
  }
  func.func @transform_5(%arg0: i32, %arg1: i32) -> (i32, i32) {
    %c0_i32 = arith.constant 0 : i32
    %c0_i32_0 = arith.constant 0 : i32
    return %arg0, %c0_i32 : i32, i32
  }
}

</mosaic_0001>

<bundles_post_ra>
// kernel: tpu_custom_call.1
= control target key start
LH: loop header
LB: loop body
LE: loop exit
PB: predicated region body
PF: predicated region fallthrough
CT: control target
= control target key end

     0   :  { %s1375_s0 = inlined_call_operand.<no memory space> [shape: f32[1], index: 0, kind: input, shape index: {}]   ;;  %s1376_s1 = inlined_call_operand.hbm [shape: f32[16,128], index: 1, kind: input, shape index: {}]   ;;  %s1377_s2 = inlined_call_operand.hbm [shape: f32[16,128], index: 2, kind: input, shape index: {}]   ;;  %s1378_s3 = inlined_call_operand.hbm [shape: f32[16,128], index: 3, kind: output, shape index: {0}]   ;;  %s1379_s4 = inlined_call_operand.hbm [shape: f32[16,128], index: 4, kind: output, shape index: {1}]   ;;  %s1380_s5 = inlined_call_operand.hbm [shape: f32[16,128], index: 5, kind: output, shape index: {2}]  }
   0x1   :  { %1382 = sst [smem:[#allocation16_spill]] %s1376_s1 }
   0x2   :  { %11 = sst [smem:[#allocation2]] %s1375_s0 }
   0x3   :  { %12 = vsyncpa [#allocation4], 0 }
   0x4   :  { %14 = vsyncpa [#allocation4 + $0x1], 0 }
   0x5   :  { %15 = vsyncpa [#allocation7], 0 }
   0x6   :  { %17 = vsyncpa [#allocation7 + $0x1], 0 }
   0x7   :  { %18 = vsyncpa [#allocation5], 0 }
   0x8   :  { %20 = vsyncpa [#allocation5 + $0x1], 0 }
   0x9   :  { %21 = vsyncpa [#allocation10], 0 }
   0xa   :  { %23 = vsyncpa [#allocation10 + $0x1], 0  ;;  %s1108_s20 = smov 0   ;;  %s1110_s21 = smov 0  }
   0xb   :  { %s1112_s22 = smov 0   ;;  %s1114_s23 = smov 0  }
   0xc   :  { %s1116_s24 = smov 0   ;;  %s1118_s25 = smov 0  }
   0xd   :  { %s1120_s0 = smov 0   ;;  %s1122_s26 = smov 0  }
   0xe LB: > { %s1147_s27 = sadd.s32 4294967295, %s1068_s26   ;;  %s1381_s28 = sadd.s32 4294967294, %s1068_s26   ;;  %s1068_s26 = sphi %s1122_s26, %s29_s26   ;;  %s1064_s0 = sphi %s1120_s0, %s1396_s0   ;;  %s1060_s25 = sphi %s1118_s25, %s1395_s25   ;;  %s1056_s24 = sphi %s1116_s24, %s1365_s24   ;;  %s1052_s23 = sphi %s1114_s23, %s1394_s23   ;;  %s1048_s22 = sphi %s1112_s22, %s1393_s22   ;;  %s1044_s21 = sphi %s1110_s21, %s1392_s21   ;;  %s1040_s20 = sphi %s1108_s20, %s1391_s20  }
   0xf   : > { %s41_s29 = sadd.s32 1, %s1064_s0  ;;  %p1037_p1 = scmp.ne.s32.totalorder %s1056_s24, 0 }
  0x10   : > { %p43_p0 = scmp.ge.s32.totalorder %s41_s29, 2  ;;  %p83_p2 = scmp.eq.s32.totalorder %s1068_s26, 0 }
  0x11   : > { %p88_p3 = scmp.ne.s32.totalorder %s1056_s24, %s1052_s23  ;;  %p89_p5 = scmp.eq.s32.totalorder %s1147_s27, 0 }
  0x12   : > { %s1398_s29 = smov (%p43_p0, %s41_s29), 0  ;;  %p1156_p4 = por %p1037_p1, %p83_p2 }
  0x13   : > { %p1161_p6 = por %p89_p5, %p88_p3  ;;  %s130_s7 = ssub.s32 %s1064_s0, %s1398_s29 }
  0x14   : > { %p131_p7 = scmp.eq.s32.totalorder %s130_s7, 0  ;;  %s133_s8 = sadd.s32 1, %s1048_s22 }
  0x15   : > { %p143_p8 = scmp.ne.s32.totalorder %s1048_s22, %s1044_s21  ;;  %p144_p9 = scmp.eq.s32.totalorder %s1147_s27, 1 }
  0x16   : > { %s1169_s9 = scalar_select %p131_p7, %s1048_s22, %s133_s8  }
  0x17   : > { %p149_p10 = scmp.ne.s32.totalorder %s1044_s21, %s1040_s20  ;;  %p150_p11 = scmp.eq.s32.totalorder %s1381_s28, 1 }
  0x18   : > { %p1178_p12 = por %p144_p9, %p143_p8  ;;  %p703_p13 = scmp.ge.s32.totalorder %s1068_s26, 2 }
  0x19   : > { %p1183_p0 = por %p150_p11, %p149_p10  ;;  %p760_p1 = scmp.lt.s32.totalorder %s1068_s26, 2 }
  0x1a   : > { %s1387_s1 = sld [smem:[#allocation16_spill]]  ;;  %s1070_s15 = smov [#allocation3]  }
  0x1b   : > { %s240_s16 = sshll.u32 %s1070_s15, 4  ;;  %p1193_p2 = pnand %p760_p1, %p1156_p4  ;;  %s241_s16 = int_to_ptr.vmem [resolvable:$true] %s240_s16 }
  0x1c   : > { %p710_p3 = scmp.ge.s32.totalorder %s1068_s26, 1  ;;  %p273_p5 = scmp.lt.s32.totalorder %s1068_s26, 3 }
  0x1d   : > { %p845_p8 = pneg %p1193_p2 }
  0x20   : > { %s238_s14 = sshll.u32 %s1387_s1, 4  ;;  %s848_s7 = scalar_lea.hbm %s1387_s1, 16  ;;  %s239_s14 = int_to_ptr.hbm [resolvable:$true] %s238_s14 }
  0x21   : > { %s841_s18 = sshra.s32 %s239_s14, 4  ;;  %s842_s18 = int_to_ptr.hbm [resolvable:$true] %s841_s18 }
  0x22   : > { %s843_s19 = scalar_lea.hbm %s842_s18, 16 }
  0x23   : > { %p844_p7 = scmp.ne.s32.totalorder %s842_s18, %s843_s19  ;;  %p850_p4 = scmp.lt.s32.totalorder %s848_s7, %s843_s19 }
  0x25   : > { %p846_p9 = pnand %p845_p8, %p844_p7 }
  0x27   : > { %p847_p10 = pneg %p846_p9 }
  0x29   : > { %p852_p11 = pnand %p850_p4, %p847_p10 }
  0x2b   : > { %855 = shalt.err (!%p852_p11)
}
  0x2c   : > { %s1071_s8 = smov 128   ;;  %s1072_s12 = smov 8  }
  0x2d   : > { %746 = dma.hbm_to_vmem [thread:$0]  (!%p1193_p2), %s239_s14, 256, %s241_s16, [#allocation4], %s1071_s8, %s1071_s8, %s1072_s12  }
  0x2e   : > { %p1213_p1 = pnand %p710_p3, %p273_p5  ;;  %s263_s19 = sshll.u32 %s1377_s2, 4  ;;  %s264_s19 = int_to_ptr.hbm [resolvable:$true] %s263_s19 }
  0x2f   : > { %s1073_s23 = smov [#allocation6]   ;;  %s871_s7 = sshra.s32 %s264_s19, 4  ;;  %s872_s7 = int_to_ptr.hbm [resolvable:$true] %s871_s7 }
  0x30   : > { %s265_s30 = sshll.u32 %s1073_s23, 4  ;;  %s873_s28 = scalar_lea.hbm %s872_s7, 16  ;;  %s266_s30 = int_to_ptr.vmem [resolvable:$true] %s265_s30 }
  0x31   : > { %p874_p7 = scmp.ne.s32.totalorder %s872_s7, %s873_s28  ;;  %s878_s1 = scalar_lea.hbm %s1377_s2, 16 }
  0x32   : > { %p880_p3 = scmp.lt.s32.totalorder %s878_s1, %s873_s28 }
  0x33   : > { %p876_p9 = pnand %p874_p7, %p845_p8 }
  0x35   : > { %p877_p10 = pneg %p876_p9 }
  0x37   : > { %p882_p5 = pnand %p880_p3, %p877_p10 }
  0x39   : > { %885 = shalt.err (!%p882_p5)
}
  0x3a   : > { %749 = dma.hbm_to_vmem [thread:$0]  (!%p1193_p2), %s264_s19, 256, %s266_s30, [#allocation7], %s1071_s8, %s1071_s8, %s1072_s12  }
  0x3b   : > { %277 = sbr.rel (%p1213_p1) target bundleno = 167 (0xa7), region = 32  ;;  %s279_s15 = sand.u32 (!%p1213_p1), 1, %s1056_s24  }
  0x3c   : > { %s711_s18 = sshll.u32 (!%p1213_p1), %s279_s15, 4  ;;  %s280_s23 = scalar_lea.sflag (!%p1213_p1), [#allocation4], %s279_s15 }
  0x3d   : > { %s283_s7 = scalar_lea.vmem (!%p1213_p1), [#allocation3], %s711_s18 }
  0x40   : > { %1022 = dma.done.wait (%p1161_p6), %s280_s23, 256  }
  0x41   : > { %1024 = vsyncadd (%p1161_p6), %s280_s23, 4294967040  ;;  %s290_s1 = scalar_lea.sflag [#allocation7], %s279_s15  ;;  %s293_s28 = scalar_lea.vmem [#allocation6], %s711_s18 }
  0x42   : > { %1026 = dma.done.wait (%p1161_p6), %s290_s1, 256  }
  0x43   : > { %1028 = vsyncadd (%p1161_p6), %s290_s1, 4294967040  ;;  %s319_s17 = sand.u32 1, %s1044_s21   ;;  %s720_s8 = sshll.u32 %s1060_s25, 4  ;;  %v1074_v0 = vmov 0.0   ;;  %v351_v1 = vld [vmem:[%s283_s7] sm:$0xff]  ;;  %v352_v2 = vld [vmem:[%s283_s7 + $0x8] sm:$0xff] }
  0x44   : > { %s713_s12 = sshll.u32 %s319_s17, 3  ;;  %s1249_s19 = sadd.s32 16, %s720_s8  ;;  %v353_v3 = vld [vmem:[%s293_s28] sm:$0xff]  ;;  %v354_v4 = vld [vmem:[%s293_s28 + $0x8] sm:$0xff] }
  0x45   : > { %s1243_s13 = scalar_lea.vmem [#allocation8], %s713_s12  ;;  %s1251_s30 = scalar_lea.vmem [#allocation9], %s713_s12  ;;  %v355_v5 = vsub.f32 %v351_v1, %v353_v3  ;;  %v371_v6 = vmax.f32 %v353_v3, 1e-07  ;;  %v356_v7 = vsub.f32 %v352_v2, %v354_v4  ;;  %v372_v8 = vmax.f32 %v354_v4, 1e-07 }
  0x46   : > { %348 = vst [vmem:[%s1243_s13] sm:$0xff] %v1074_v0  ;;  %s1255_s6 = scalar_lea.vmem [#allocation11], %s713_s12  ;;  %s1259_s14 = sld [smem:[#allocation2]] }
  0x47   : > { %349 = vst [vmem:[%s1251_s30] sm:$0xff] %v1074_v0  ;;  %v357_v9 = vand.u32 2147483647, %v355_v5  ;;  %v361_v10 = vmul.f32 0.5, %v355_v5  ;;  %837 = vrcp.f32 %v371_v6  ;;  %v358_v11 = vand.u32 2147483647, %v356_v7  ;;  %p721_p6 = scmp.gt.s32.totalorder %s1249_s19, 4 }
  0x48   : > { %350 = vst [vmem:[%s1255_s6] sm:$0xff] %v1074_v0  ;;  %v362_v12 = vmul.f32 0.5, %v356_v7  ;;  %839 = vrcp.f32 %v372_v8  ;;  %vm378_vm2 = vweird.f32 %v371_v6  ;;  %v384_v24 = vand.u32 2147483648, %v371_v6 }
  0x49   : > { %v363_v13 = vmul.f32 %v361_v10, %v355_v5  ;;  %v716_v14 = vadd.f32 -0.005, %v357_v9  ;;  %vm359_vm0 = vcmp.lt.f32.partialorder %v357_v9, 0.01  ;;  %v717_v16 = vadd.f32 -0.005, %v358_v11 }
  0x4a   : > { %v364_v15 = vmul.f32 %v362_v12, %v356_v7  ;;  %vm360_vm1 = vcmp.lt.f32.partialorder %v358_v11, 0.01  ;;  %v382_v26 = vand.u32 2147483647, %v371_v6  ;;  %vm393_vm4 = vweird.f32 %v372_v8 }
  0x4b   : > { %v367_v17 = vmul.f32 0.01, %v716_v14  ;;  %v368_v18 = vmul.f32 0.01, %v717_v16  ;;  %v399_v28 = vand.u32 2147483648, %v372_v8  ;;  %v385_v32 = vor.u32 1.1754944e-38, %v384_v24 }
  0x4c   : > { %v397_v31 = vand.u32 2147483647, %v372_v8  ;;  %s404_s16 = smul.f32 0.01, %s1259_s14  ;;  %vm383_vm7 = vcmp.eq.f32.partialorder %v382_v26, 8.507059e+37 }
  0x4d   : > { %v838_v19 = vpop.eup %837  ;;  %v369_v20 = vsel %vm359_vm0, %v363_v13, %v367_v17  ;;  %v1261_v21 = vsel %vm360_vm1, %v364_v15, %v368_v18  ;;  %v400_v35 = vor.u32 1.1754944e-38, %v399_v28 }
  0x4e   : > { %v374_v22 = vmul.f32 %v838_v19, %v371_v6  ;;  %v840_v23 = vpop.eup %839  ;;  %vm379_vm3 = vweird.f32 %v838_v19  ;;  %vm398_vm9 = vcmp.eq.f32.partialorder %v397_v31, 8.507059e+37  ;;  %v405_v39 = vstv %s404_s16 }
  0x4f   : > { %v389_v27 = vmul.f32 %v840_v23, %v372_v8  ;;  %vm394_vm5 = vweird.f32 %v840_v23  ;;  %vm380_vm6 = vmor %vm378_vm2, %vm379_vm3 }
  0x50   : > { %v375_v25 = vsub.f32 1.0, %v374_v22  ;;  %vm395_vm8 = vmor %vm393_vm4, %vm394_vm5 }
  0x51   : > { %v390_v30 = vsub.f32 1.0, %v389_v27 }
  0x52   : > { %v376_v29 = vmul.f32 %v838_v19, %v375_v25 }
  0x53   : > { %v391_v34 = vmul.f32 %v840_v23, %v390_v30 }
  0x54   : > { %v377_v33 = vadd.f32 %v838_v19, %v376_v29 }
  0x55   : > { %v392_v37 = vadd.f32 %v840_v23, %v391_v34 }
  0x56   : > { %v381_v36 = vsel %vm380_vm6, %v838_v19, %v377_v33 }
  0x57   : > { %v386_v38 = vsel %vm383_vm7, %v385_v32, %v381_v36  ;;  %v396_v41 = vsel %vm395_vm8, %v840_v23, %v392_v37 }
  0x58   : > { %v387_v40 = vmul.f32 %v386_v38, %v357_v9  ;;  %v401_v42 = vsel %vm398_vm9, %v400_v35, %v396_v41  ;;  %419 = sbr.rel (%p721_p6) target bundleno = 100 (0x64), region = 48 }
  0x59   : > { %v402_v43 = vmul.f32 %v401_v42, %v358_v11 }
  0x5a   : > { %vm406_vm10 = vcmp.lt.f32.partialorder %v387_v40, %v405_v39 }
  0x5b   : > { %v718_v44 = vsel %vm406_vm10, 1.0, %v1074_v0  ;;  %vm407_vm11 = vcmp.lt.f32.partialorder %v402_v43, %v405_v39 }
  0x5c   : > { %v719_v45 = vsel %vm407_vm11, 1.0, %v1074_v0 }
  0x5d   : > { %v420_v46 = vld [vmem:[%s1243_s13] sm:$0xff]  ;;  %v421_v47 = vadd.f32 %v1261_v21, %v369_v20  ;;  %v424_v48 = vld [vmem:[%s1251_s30] sm:$0xff]  ;;  %v425_v49 = vadd.f32 %v402_v43, %v387_v40  ;;  %v429_v51 = vadd.f32 %v719_v45, %v718_v44 }
  0x5e   : > { %v428_v50 = vld [vmem:[%s1255_s6] sm:$0xff] }
  0x5f   : > { %v422_v52 = vadd.f32 %v421_v47, %v420_v46  ;;  %v426_v53 = vadd.f32 %v425_v49, %v424_v48  ;;  %v430_v54 = vadd.f32 %v429_v51, %v428_v50 }
  0x61   : > { %423 = vst [vmem:[%s1243_s13] sm:$0xff] %v422_v52 }
  0x62   : > { %427 = vst [vmem:[%s1251_s30] sm:$0xff] %v426_v53 }
  0x63   : > { %431 = vst [vmem:[%s1255_s6] sm:$0xff] %v430_v54 }
  0x64 PF: > { %p722_p2 = scmp.le.s32.totalorder %s1249_s19, 4 }
  0x66   : > { %434 = sbr.rel (%p722_p2) target bundleno = 124 (0x7c), region = 52 }
  0x6b   : > { %v435_v55 = vlaneseq  ;;  %v438_v56 = vstv %s720_s8  ;;  %v458_v1 = vld [vmem:[%s1243_s13] sm:$0xff]  ;;  %v462_v3 = vld [vmem:[%s1251_s30] sm:$0xff] }
  0x6c   : > { %v466_v5 = vld [vmem:[%s1255_s6] sm:$0xff] }
  0x6d   : > { %v436_v57 = vshrl.u32 %v435_v55, 7 }
  0x6f   : > { %v437_v58 = vadd.s32 8, %v436_v57  ;;  %v439_v59 = vadd.s32 %v438_v56, %v436_v57 }
  0x71   : > { %v440_v60 = vadd.s32 %v438_v56, %v437_v58  ;;  %vm443_vm12 = vcmp.lt.s32.totalorder %v439_v59, 4 }
  0x72   : > { %v452_v61 = vsel %vm443_vm12, %v369_v20, 0.0  ;;  %v454_v62 = vsel %vm443_vm12, %v387_v40, 0.0  ;;  %v456_v63 = vsel %vm443_vm12, %v718_v44, 0.0 }
  0x73   : > { %vm444_vm13 = vcmp.lt.s32.totalorder %v440_v60, 4 }
  0x74   : > { %v453_v0 = vsel %vm444_vm13, %v1261_v21, 0.0  ;;  %v455_v2 = vsel %vm444_vm13, %v402_v43, 0.0  ;;  %v457_v4 = vsel %vm444_vm13, %v719_v45, 0.0 }
  0x75   : > { %v459_v6 = vadd.f32 %v453_v0, %v452_v61  ;;  %v463_v7 = vadd.f32 %v455_v2, %v454_v62  ;;  %v467_v8 = vadd.f32 %v457_v4, %v456_v63 }
  0x77   : > { %v460_v9 = vadd.f32 %v459_v6, %v458_v1  ;;  %v464_v10 = vadd.f32 %v463_v7, %v462_v3  ;;  %v468_v11 = vadd.f32 %v467_v8, %v466_v5 }
  0x79   : > { %461 = vst [vmem:[%s1243_s13] sm:$0xff] %v460_v9 }
  0x7a   : > { %465 = vst [vmem:[%s1251_s30] sm:$0xff] %v464_v10 }
  0x7b   : > { %469 = vst [vmem:[%s1255_s6] sm:$0xff] %v468_v11 }
  0x7c PF: > { %s487_s15 = sand.u32 1, %s1147_s27   ;;  %s1289_s18 = sshll.u32 %s1060_s25, 3 }
  0x7d   : > { %s517_s1 = scalar_lea.hbm %s1379_s4, %s1289_s18  ;;  %s519_s28 = sshll.u32 %s1251_s30, 4  ;;  %s520_s28 = int_to_ptr.vmem [resolvable:$true] %s519_s28 }
  0x7e   : > { %s521_s8 = sshll.u32 %s517_s1, 4  ;;  %s1298_s12 = scalar_lea.sflag [#allocation10], %s487_s15  ;;  %s522_s8 = int_to_ptr.hbm [resolvable:$true] %s521_s8 }
  0x7f   : > { %s915_s27 = sshra.s32 %s522_s8, 4  ;;  %s921_s16 = scalar_lea.hbm %s1379_s4, 16  ;;  %s916_s27 = int_to_ptr.hbm [resolvable:$true] %s915_s27 }
  0x80   : > { %v473_v13 = vld [vmem:[%s1243_s13] sm:$0xff]  ;;  %s917_s25 = scalar_lea.hbm %s916_s27, 8  ;;  %p922_p1 = scmp.lt.s32.totalorder %s916_s27, %s1379_s4 }
  0x81   : > { %v476_v12 = vld [vmem:[%s1251_s30] sm:$0xff]  ;;  %v474_v16 = vmul.f32 0.001953125, %v473_v13  ;;  %p918_p8 = scmp.ne.s32.totalorder %s916_s27, %s917_s25  ;;  %p923_p7 = scmp.lt.s32.totalorder %s921_s16, %s917_s25 }
  0x82   : > { %v479_v14 = vld [vmem:[%s1255_s6] sm:$0xff]  ;;  %v477_v15 = vmul.f32 0.001953125, %v476_v12 }
  0x83   : > { %v480_v17 = vmul.f32 0.001953125, %v479_v14  ;;  %475 = vst [vmem:[%s1243_s13] sm:$0xff] %v474_v16  ;;  %p919_p4 = pnand %p918_p8, %p1178_p12  ;;  %p924_p9 = por %p923_p7, %p922_p1 }
  0x84   : > { %478 = vst [vmem:[%s1251_s30] sm:$0xff] %v477_v15 }
  0x85   : > { %p920_p11 = pneg %p919_p4 }
  0x87   : > { %p925_p10 = pnand %p924_p9, %p920_p11 }
  0x89   : > { %928 = shalt.err (!%p925_p10)
}
  0x8a   : > { %738 = dma.vmem_to_hbm [thread:$0]  (%p1178_p12), %s520_s28, 128, %s522_s8, %s1298_s12   ;;  %481 = vst [vmem:[%s1255_s6] sm:$0xff] %v480_v17 }
  0x8b   : > { %s503_s1 = scalar_lea.hbm %s1378_s3, %s1289_s18  ;;  %s505_s19 = sshll.u32 %s1243_s13, 4  ;;  %s506_s19 = int_to_ptr.vmem [resolvable:$true] %s505_s19 }
  0x8c   : > { %s507_s27 = sshll.u32 %s503_s1, 4  ;;  %s483_s25 = scalar_lea.sflag [#allocation5], %s319_s17  ;;  %s508_s27 = int_to_ptr.hbm [resolvable:$true] %s507_s27 }
  0x8d   : > { %s943_s14 = sshra.s32 %s508_s27, 4  ;;  %s949_s8 = scalar_lea.hbm %s1378_s3, 16  ;;  %s944_s14 = int_to_ptr.hbm [resolvable:$true] %s943_s14 }
  0x8e   : > { %s945_s16 = scalar_lea.hbm %s944_s14, 8  ;;  %p950_p2 = scmp.lt.s32.totalorder %s944_s14, %s1378_s3 }
  0x8f   : > { %p946_p3 = scmp.ne.s32.totalorder %s944_s14, %s945_s16  ;;  %p951_p8 = scmp.lt.s32.totalorder %s949_s8, %s945_s16 }
  0x91   : > { %p947_p5 = pnand %p946_p3, %p1178_p12  ;;  %p952_p4 = por %p951_p8, %p950_p2 }
  0x93   : > { %p948_p6 = pneg %p947_p5 }
  0x95   : > { %p953_p11 = pnand %p952_p4, %p948_p6 }
  0x97   : > { %956 = shalt.err (!%p953_p11)
}
  0x98   : > { %737 = dma.vmem_to_hbm [thread:$0]  (%p1178_p12), %s506_s19, 128, %s508_s27, %s483_s25  }
  0x99   : > { %s531_s15 = scalar_lea.hbm %s1380_s5, %s1289_s18  ;;  %s533_s1 = sshll.u32 %s1255_s6, 4  ;;  %s534_s1 = int_to_ptr.vmem [resolvable:$true] %s533_s1 }
  0x9a   : > { %s535_s23 = sshll.u32 %s531_s15, 4  ;;  %s977_s7 = scalar_lea.hbm %s1380_s5, 16  ;;  %s536_s23 = int_to_ptr.hbm [resolvable:$true] %s535_s23 }
  0x9b   : > { %s971_s28 = sshra.s32 %s536_s23, 4  ;;  %s972_s28 = int_to_ptr.hbm [resolvable:$true] %s971_s28 }
  0x9c   : > { %s973_s14 = scalar_lea.hbm %s972_s28, 8  ;;  %p978_p10 = scmp.lt.s32.totalorder %s972_s28, %s1380_s5 }
  0x9d   : > { %p974_p1 = scmp.ne.s32.totalorder %s972_s28, %s973_s14  ;;  %p979_p3 = scmp.lt.s32.totalorder %s977_s7, %s973_s14 }
  0x9f   : > { %p975_p7 = pnand %p974_p1, %p1178_p12  ;;  %p980_p5 = por %p979_p3, %p978_p10 }
  0xa1   : > { %p976_p9 = pneg %p975_p7 }
  0xa3   : > { %p981_p6 = pnand %p980_p5, %p976_p9 }
  0xa5   : > { %984 = shalt.err (!%p981_p6)
}
  0xa6   : > { %739 = dma.vmem_to_hbm [thread:$0]  (%p1178_p12), %s534_s1, 128, %s536_s23, %s1298_s12  }
  0xa7 PF: > { %s547_s6 = sand.u32 1, %s1040_s20   ;;  %p751_p2 = pnand %p703_p13, %p1183_p0 }
  0xa8   : > { %s548_s18 = scalar_lea.sflag [#allocation5], %s547_s6 }
  0xa9   : > { %p752_p8 = pneg %p751_p2 }
  0xab   : > { %1030 = dma.done.wait (%p752_p8), %s548_s18, 128  }
  0xac   : > { %1032 = vsyncadd (%p752_p8), %s548_s18, 4294967168  ;;  %s1390_s25 = sadd.s32 4294967294, %s1068_s26  }
  0xad   : > { %s557_s30 = sand.u32 1, %s1390_s25  }
  0xae   : > { %s558_s17 = scalar_lea.sflag [#allocation10], %s557_s30 }
  0xaf   : > { %1034 = dma.done.wait (%p752_p8), %s558_s17, 256  }
  0xb0   : > { %1036 = vsyncadd (%p752_p8), %s558_s17, 4294967040  ;;  %s29_s26 = sadd.s32 1, %s1068_s26   ;;  %s1391_s20 = smov %s1044_s21 }
  0xb1   : > { %p26_p12 = scmp.ge.s32.totalorder %s29_s26, 4   ;;  %s1392_s21 = smov %s1048_s22 }
  0xb2   : > { %s1393_s22 = smov %s1169_s9  ;;  %s1394_s23 = smov %s1056_s24 }
  0xb3   : > { %s1365_s24 = smov 0   ;;  %s1395_s25 = smov %s1064_s0 }
  0xb4   : > { %s1396_s0 = smov %s1398_s29  ;;  %28 = sbr.rel (!%p26_p12) target bundleno = 14 (0xe), region = 138 }
  0xb9   :  { %574 = vsyncpa [#allocation4], 1 }
  0xba   :  { %576 = vsyncpa [#allocation4 + $0x1], 1 }
  0xbb   :  { %577 = vsyncpa [#allocation7], 1 }
  0xbc   :  { %579 = vsyncpa [#allocation7 + $0x1], 1 }
  0xbd   :  { %580 = vsyncpa [#allocation5], 1 }
  0xbe   :  { %582 = vsyncpa [#allocation5 + $0x1], 1 }
  0xbf   :  { %583 = vsyncpa [#allocation10], 1 }
  0xc0   :  { %585 = vsyncpa [#allocation10 + $0x1], 1 }

</bundles_post_ra>
